<compile_context>
chip_gen: v7x
topology: tpu7x:2x2x1
jax: 0.10.0
libtpu: 0.0.40
codegen_flags: <defaults>
</compile_context>

<pallas_src>
import jax
import jax.numpy as jnp
from jax.experimental import pallas as pl
from jax.experimental.pallas import tpu as pltpu


# ----------------------------------------------------------------------------
# Kernel bodies
# ----------------------------------------------------------------------------
def _attention_tile(x3, x2, len3, w_lin, b_lin, w_att, out_ref, soft_ref):
    """Shared per-tile math.

    x3:   (tb, S, H)   enc_sents tile (attended inputs)
    x2:   (tb*S, H)    enc_sent_com_attent tile, flattened (projection inputs)
    len3: (tb, 1, 1)   int32 lengths
    """
    tb, S, H = x3.shape

    # --- projection: single MXU matmul with M = tb*S -------------------------
    emb = jnp.tanh(
        jnp.dot(x2, w_lin, preferred_element_type=jnp.float32) + b_lin
    )                                                                 # (tb*S, A)

    # --- attention logits: VPU multiply + lane reduce (no (A,1) matmul) ------
    att_col = jnp.sum(emb * w_att, axis=-1, keepdims=True)            # (tb*S, 1)
    att3 = att_col.reshape(tb, S, 1)                                  # (tb, S, 1)

    # --- masked softmax (plain exp, mask, +1e-4: parity with _masked_softmax).
    # Safe without max-subtraction only because |logit| <= sum|w_att| (tanh-
    # bounded activations); revisit if A or the attention weights grow large.
    pos = jax.lax.broadcasted_iota(jnp.int32, (tb, S, 1), 1)
    mask = (pos < len3).astype(jnp.float32)                           # (tb, S, 1)
    ex = jnp.exp(att3) * mask
    denom = jnp.sum(ex, axis=1, keepdims=True) + 1e-4                 # (tb, 1, 1)
    soft3 = ex / denom                                                # (tb, S, 1)

    # --- attended sum: broadcast-mul + sublane reduce (no (1,S)@(S,H) matmul)
    out_ref[...] = jnp.sum(soft3 * x3, axis=1)                        # (tb, H)

    # --- softmax weights, stored as a lane-dense (1, tb*S) row ----------------
    soft_ref[0] = jnp.transpose(soft3.reshape(tb * S, 1))             # (1, tb*S)


def attention_kernel(sents_ref,            # (TB, S, H)   enc_sents tile
                     attent_ref,           # (TB*S, H)    enc_sent_com_attent, flat
                     len_ref,              # (TB, 1, 1)   int32 lengths
                     w_lin_ref,            # (H, A)
                     b_lin_ref,            # (1, A)
                     w_att_ref,            # (1, A)
                     out_ref,              # (TB, H)      attended sum
                     soft_ref):            # (1, 1, TB*S) softmax weights
    _attention_tile(sents_ref[...], attent_ref[...], len_ref[...],
                    w_lin_ref[...], b_lin_ref[...], w_att_ref[...],
                    out_ref, soft_ref)


def attention_kernel_shared(sents_ref,     # (TB, S, H)   shared input tile
                            len_ref, w_lin_ref, b_lin_ref, w_att_ref,
                            out_ref, soft_ref):
    x3 = sents_ref[...]
    tb, S, H = x3.shape
    # In-kernel flatten of the single streamed tile (layout-preserving when S
    # is a multiple of the sublane count; cheap VMEM repack otherwise) — avoids
    # streaming the same HBM bytes twice.
    x2 = x3.reshape(tb * S, H)
    _attention_tile(x3, x2, len_ref[...],
                    w_lin_ref[...], b_lin_ref[...], w_att_ref[...],
                    out_ref, soft_ref)


# ----------------------------------------------------------------------------
# Tiling heuristic
# ----------------------------------------------------------------------------
def _choose_tile_batch(B, S, H, itemsize=4, target_tile_bytes=1 << 20):
    """Pick a batch-tile tb with tb % 8 == 0 and (tb*S) % 128 == 0.

    Keeps each streamed (tb*S, H) f32 tile around `target_tile_bytes` so
    BlockSpec double-buffering fits the tightest (v5e) default VMEM budget,
    and prefers >= 2 grid steps so v7x's two TensorCores both get work.
    """
    base = 8
    while (base * S) % 128 != 0:
        base += 8                                   # base <= 128 always

    row_bytes = S * H * itemsize
    cap = max(base, (max(1, target_tile_bytes // row_bytes) // base) * base)

    b_pad_min = -(-B // base) * base                # round_up(B, base)
    tb = min(cap, b_pad_min)
    if b_pad_min >= 2 * base and tb >= b_pad_min:
        # would otherwise be a single monolithic grid step: split it in two.
        tb = max(base, ((b_pad_min // 2) // base) * base)
    return tb


# ----------------------------------------------------------------------------
# Wrapper
# ----------------------------------------------------------------------------
def attention_forward(enc_sents, enc_sent_com_attent, len_s,
                      w_lin, b_lin, w_att, tb=None, shared=None):
    """w_lin: (A, H) torch Linear weight; b_lin: (A,); w_att: (1, A) (no bias).

    Returns (attended (B, H), att_soft (B, S)), matching the PyTorch module.
    """
    B, S, H = enc_sents.shape
    A = w_lin.shape[0]

    if shared is None:
        shared = enc_sent_com_attent is enc_sents

    if tb is None:
        tb = _choose_tile_batch(B, S, H)
    assert tb % 8 == 0 and (tb * S) % 128 == 0, (tb, S)

    B_pad = -(-B // tb) * tb
    nb = B_pad // tb
    pad = B_pad - B

    f32 = jnp.float32
    sents = enc_sents.astype(f32)
    lens = len_s.astype(jnp.int32)
    if pad:
        # Padded rows get len=0 -> mask is all-zero -> soft=0, attended=0.
        sents = jnp.pad(sents, ((0, pad), (0, 0), (0, 0)))
        lens = jnp.pad(lens, ((0, pad),))
    len3 = lens.reshape(B_pad, 1, 1)

    w_lin_t = jnp.transpose(w_lin).astype(f32)           # (H, A)
    b_lin_2d = b_lin.reshape(1, A).astype(f32)            # (1, A)
    w_att_row = w_att.reshape(1, A).astype(f32)           # (1, A)

    # Common specs (resident weights via constant index maps).
    sents_spec = pl.BlockSpec((tb, S, H), lambda b: (b, 0, 0))
    len_spec = pl.BlockSpec((tb, 1, 1), lambda b: (b, 0, 0))
    w_lin_spec = pl.BlockSpec((H, A), lambda b: (0, 0))
    b_lin_spec = pl.BlockSpec((1, A), lambda b: (0, 0))
    w_att_spec = pl.BlockSpec((1, A), lambda b: (0, 0))
    out_specs = (
        pl.BlockSpec((tb, H), lambda b: (b, 0)),           # attended (B_pad, H)
        pl.BlockSpec((1, 1, tb * S), lambda b: (b, 0, 0)),  # lane-dense soft rows
    )
    out_shape = (jax.ShapeDtypeStruct((B_pad, H), f32),
                 jax.ShapeDtypeStruct((nb, 1, tb * S), f32))

    # Advisory cost estimate (mem-bound, ~4 FLOP/byte).
    n_inputs = 1 if shared else 2
    cost = pl.CostEstimate(
        flops=2 * B_pad * S * (H * A + A + H),
        transcendentals=B_pad * S * (A + 1),
        bytes_accessed=(n_inputs * B_pad * S * H + B_pad * H + B_pad * S
                        + B_pad + H * A + 2 * A) * 4,
    )
    cparams = pltpu.CompilerParams(dimension_semantics=("parallel",))

    if shared:
        grid_spec = pltpu.PrefetchScalarGridSpec(
            num_scalar_prefetch=0, grid=(nb,),
            in_specs=[sents_spec, len_spec, w_lin_spec, b_lin_spec, w_att_spec],
            out_specs=out_specs)
        out, soft_rows = pl.pallas_call(
            attention_kernel_shared, out_shape=out_shape, grid_spec=grid_spec,
            compiler_params=cparams, cost_estimate=cost,
        )(sents, len3, w_lin_t, b_lin_2d, w_att_row)
    else:
        attent = enc_sent_com_attent.astype(f32)
        if pad:
            attent = jnp.pad(attent, ((0, pad), (0, 0), (0, 0)))
        attent_flat = attent.reshape(B_pad * S, H)         # free HBM reshape
        attent_spec = pl.BlockSpec((tb * S, H), lambda b: (b, 0))
        grid_spec = pltpu.PrefetchScalarGridSpec(
            num_scalar_prefetch=0, grid=(nb,),
            in_specs=[sents_spec, attent_spec, len_spec,
                      w_lin_spec, b_lin_spec, w_att_spec],
            out_specs=out_specs)
        out, soft_rows = pl.pallas_call(
            attention_kernel, out_shape=out_shape, grid_spec=grid_spec,
            compiler_params=cparams, cost_estimate=cost,
        )(sents, attent_flat, len3, w_lin_t, b_lin_2d, w_att_row)

    soft = soft_rows.reshape(B_pad, S)
    if pad:
        return out[:B], soft[:B]
    return out, soft


# ----------------------------------------------------------------------------
# Pure-JAX reference (mirror of the PyTorch forward) for verification
# ----------------------------------------------------------------------------
def attention_reference(enc_sents, enc_attent, len_s, w_lin, b_lin, w_att):
    emb = jnp.tanh(enc_attent @ w_lin.T + b_lin)               # (B, S, A)
    att = (emb @ w_att.reshape(-1, 1))[..., 0]                 # (B, S)
    S = att.shape[1]
    idx = jnp.arange(S)[None, :]
    mask = (idx < len_s[:, None]).astype(jnp.float32)
    ex = jnp.exp(att) * mask
    denom = jnp.sum(ex, axis=1, keepdims=True) + 1e-4
    soft = ex / denom
    attended = jnp.sum(soft[..., None] * enc_sents, axis=1)    # (B, H)
    return attended, soft


if __name__ == "__main__":
    key = jax.random.PRNGKey(0)
    k1, k2, k3, k4, k5, k6, k7 = jax.random.split(key, 7)

    H, A = 32, 16      # hid_size, att_size

    # deterministic xavier-uniform-style init (synthetic, not a checkpoint)
    bnd_lin = (6.0 / (A + H)) ** 0.5
    w_lin = jax.random.uniform(k3, (A, H), jnp.float32, -bnd_lin, bnd_lin)
    b_lin = jax.random.uniform(k4, (A,), jnp.float32, -0.1, 0.1)
    bnd_att = (6.0 / (1 + A)) ** 0.5
    w_att = jax.random.uniform(k5, (1, A), jnp.float32, -bnd_att, bnd_att)

    # --- case 1: tiny batch, separate enc_sents / enc_sent_com_attent --------
    B, S = 2, 8
    enc_sents = jax.random.normal(k1, (B, S, H), jnp.float32)
    enc_attent = jax.random.normal(k2, (B, S, H), jnp.float32)
    len_s = jnp.array([S, 5], dtype=jnp.int32)   # max(len_s) == S, as the module assumes

    att, soft = attention_forward(enc_sents, enc_attent, len_s, w_lin, b_lin, w_att)
    jax.block_until_ready((att, soft))
    ref_att, ref_soft = attention_reference(enc_sents, enc_attent, len_s,
                                            w_lin, b_lin, w_att)
    assert att.shape == (B, H) and soft.shape == (B, S)
    assert jnp.allclose(att, ref_att, rtol=1e-5, atol=1e-5)
    assert jnp.allclose(soft, ref_soft, rtol=1e-5, atol=1e-5)

    # --- case 2: shared input (HAN-style), multi-step grid + batch padding ---
    B2, S2 = 50, 8
    enc_shared = jax.random.normal(k6, (B2, S2, H), jnp.float32)
    len2 = jax.random.randint(k7, (B2,), 1, S2 + 1).astype(jnp.int32)
    len2 = len2.at[0].set(S2)                     # ensure max(len) == S2

    att2, soft2 = attention_forward(enc_shared, enc_shared, len2,
                                    w_lin, b_lin, w_att)
    jax.block_until_ready((att2, soft2))
    ref_att2, ref_soft2 = attention_reference(enc_shared, enc_shared, len2,
                                              w_lin, b_lin, w_att)
    assert att2.shape == (B2, H) and soft2.shape == (B2, S2)
    assert jnp.allclose(att2, ref_att2, rtol=1e-5, atol=1e-5)
    assert jnp.allclose(soft2, ref_soft2, rtol=1e-5, atol=1e-5)

    print("KERNEL_OK")
</pallas_src>

<mosaic_0001>
module attributes {stable_mosaic.version = 11 : i64} {
  func.func @attention_kernel(%arg0: i32, %arg1: memref<16x8x32xf32, #tpu.memory_space<vmem>>, %arg2: memref<128x32xf32, #tpu.memory_space<vmem>>, %arg3: memref<16x1x1xi32, #tpu.memory_space<vmem>>, %arg4: memref<32x16xf32, #tpu.memory_space<vmem>>, %arg5: memref<1x16xf32, #tpu.memory_space<vmem>>, %arg6: memref<1x16xf32, #tpu.memory_space<vmem>>, %arg7: memref<16x32xf32, #tpu.memory_space<vmem>>, %arg8: memref<1x1x128xf32, #tpu.memory_space<vmem>>) attributes {dimension_semantics = [#tpu.dimension_semantics<parallel>], iteration_bounds = array<i64: 1>, scalar_prefetch = 0 : i64, scratch_operands = 0 : i64, tpu.core_type = #tpu.core_type<tc>, window_params = [{transform_indices = @transform_0, window_bounds = array<i64: 16, 8, 32>}, {transform_indices = @transform_1, window_bounds = array<i64: 128, 32>}, {transform_indices = @transform_2, window_bounds = array<i64: 16, 1, 1>}, {pipeline_mode = #tpu.pipeline_mode<synchronous>, transform_indices = @transform_3, window_bounds = array<i64: 32, 16>}, {pipeline_mode = #tpu.pipeline_mode<synchronous>, transform_indices = @transform_4, window_bounds = array<i64: 1, 16>}, {pipeline_mode = #tpu.pipeline_mode<synchronous>, transform_indices = @transform_5, window_bounds = array<i64: 1, 16>}, {transform_indices = @transform_6, window_bounds = array<i64: 16, 32>}, {transform_indices = @transform_7, window_bounds = array<i64: 1, 1, 128>}]} {
    %c0 = arith.constant 0 : index
    %c0_0 = arith.constant 0 : index
    %c0_1 = arith.constant 0 : index
    %0 = vector.load %arg1[%c0, %c0_0, %c0_1] : memref<16x8x32xf32, #tpu.memory_space<vmem>>, vector<16x8x32xf32>
    %c0_2 = arith.constant 0 : index
    %c0_3 = arith.constant 0 : index
    %1 = vector.load %arg2[%c0_2, %c0_3] : memref<128x32xf32, #tpu.memory_space<vmem>>, vector<128x32xf32>
    %c0_4 = arith.constant 0 : index
    %c0_5 = arith.constant 0 : index
    %c0_6 = arith.constant 0 : index
    %2 = vector.load %arg3[%c0_4, %c0_5, %c0_6] : memref<16x1x1xi32, #tpu.memory_space<vmem>>, vector<16x1x1xi32>
    %c0_7 = arith.constant 0 : index
    %c0_8 = arith.constant 0 : index
    %3 = vector.load %arg4[%c0_7, %c0_8] : memref<32x16xf32, #tpu.memory_space<vmem>>, vector<32x16xf32>
    %c0_9 = arith.constant 0 : index
    %c0_10 = arith.constant 0 : index
    %4 = vector.load %arg5[%c0_9, %c0_10] : memref<1x16xf32, #tpu.memory_space<vmem>>, vector<1x16xf32>
    %c0_11 = arith.constant 0 : index
    %c0_12 = arith.constant 0 : index
    %5 = vector.load %arg6[%c0_11, %c0_12] : memref<1x16xf32, #tpu.memory_space<vmem>>, vector<1x16xf32>
    %cst = arith.constant dense<0.000000e+00> : vector<128x16xf32>
    %6 = tpu.matmul %1, %3, %cst {dimension_numbers = #tpu.dot_dimension_numbers<[1], [0], [0], [1], [0, 0, 1, 1], [], []>} : vector<128x32xf32>, vector<32x16xf32>, vector<128x16xf32> -> vector<128x16xf32>
    %7 = vector.broadcast %4 : vector<1x16xf32> to vector<128x16xf32>
    %8 = arith.addf %6, %7 : vector<128x16xf32>
    %9 = math.tanh %8 : vector<128x16xf32>
    %10 = vector.broadcast %5 : vector<1x16xf32> to vector<128x16xf32>
    %11 = arith.mulf %9, %10 : vector<128x16xf32>
    %cst_13 = arith.constant dense<0.000000e+00> : vector<128xf32>
    %12 = vector.multi_reduction <add>, %11, %cst_13 [1] : vector<128x16xf32> to vector<128xf32>
    %13 = vector.shape_cast %12 : vector<128xf32> to vector<128x1xf32>
    %14 = vector.shape_cast %13 : vector<128x1xf32> to vector<16x8x1xf32>
    %15 = tpu.iota {dimensions = array<i32: 1>} : vector<16x8x1xi32>
    %16 = vector.broadcast %2 : vector<16x1x1xi32> to vector<16x8x1xi32>
    %17 = arith.cmpi slt, %15, %16 : vector<16x8x1xi32>
    %18 = arith.extui %17 : vector<16x8x1xi1> to vector<16x8x1xi32>
    %19 = arith.sitofp %18 : vector<16x8x1xi32> to vector<16x8x1xf32>
    %20 = math.exp %14 : vector<16x8x1xf32>
    %21 = arith.mulf %20, %19 : vector<16x8x1xf32>
    %cst_14 = arith.constant dense<0.000000e+00> : vector<16x1xf32>
    %22 = vector.multi_reduction <add>, %21, %cst_14 [1] : vector<16x8x1xf32> to vector<16x1xf32>
    %23 = vector.shape_cast %22 : vector<16x1xf32> to vector<16x1x1xf32>
    %cst_15 = arith.constant 9.99999974E-5 : f32
    %24 = vector.broadcast %cst_15 : f32 to vector<16x1x1xf32>
    %25 = arith.addf %23, %24 : vector<16x1x1xf32>
    %26 = vector.broadcast %25 : vector<16x1x1xf32> to vector<16x8x1xf32>
    %27 = arith.divf %21, %26 : vector<16x8x1xf32>
    %28 = vector.broadcast %27 : vector<16x8x1xf32> to vector<16x8x32xf32>
    %29 = arith.mulf %28, %0 : vector<16x8x32xf32>
    %cst_16 = arith.constant dense<0.000000e+00> : vector<16x32xf32>
    %30 = vector.multi_reduction <add>, %29, %cst_16 [1] : vector<16x8x32xf32> to vector<16x32xf32>
    %c0_17 = arith.constant 0 : index
    %c0_18 = arith.constant 0 : index
    %31 = vector.load %arg7[%c0_17, %c0_18] : memref<16x32xf32, #tpu.memory_space<vmem>>, vector<16x32xf32>
    tpu.vector_store %arg7[%c0_17, %c0_18], %30 {strides = array<i32>} : memref<16x32xf32, #tpu.memory_space<vmem>>, vector<16x32xf32>,
    %32 = vector.shape_cast %27 : vector<16x8x1xf32> to vector<128x1xf32>
    %33 = tpu.transpose %32, [1, 0] : vector<128x1xf32> -> vector<1x128xf32>
    %c0_19 = arith.constant 0 : index
    %c0_20 = arith.constant 0 : index
    %c0_21 = arith.constant 0 : index
    %34 = vector.load %arg8[%c0_19, %c0_20, %c0_21] : memref<1x1x128xf32, #tpu.memory_space<vmem>>, vector<1x1x128xf32>
    %35 = vector.shape_cast %34 : vector<1x1x128xf32> to vector<1x128xf32>
    %36 = vector.shape_cast %33 : vector<1x128xf32> to vector<1x1x128xf32>
    tpu.vector_store %arg8[%c0_19, %c0_20, %c0_21], %36 {strides = array<i32>} : memref<1x1x128xf32, #tpu.memory_space<vmem>>, vector<1x1x128xf32>,
    return
  }
  func.func @transform_0(%arg0: i32) -> (i32, i32, i32) {
    %c0_i32 = arith.constant 0 : i32
    %c0_i32_0 = arith.constant 0 : i32
    %c0_i32_1 = arith.constant 0 : i32
    return %arg0, %c0_i32, %c0_i32_0 : i32, i32, i32
  }
  func.func @transform_1(%arg0: i32) -> (i32, i32) {
    %c0_i32 = arith.constant 0 : i32
    %c0_i32_0 = arith.constant 0 : i32
    return %arg0, %c0_i32 : i32, i32
  }
  func.func @transform_2(%arg0: i32) -> (i32, i32, i32) {
    %c0_i32 = arith.constant 0 : i32
    %c0_i32_0 = arith.constant 0 : i32
    %c0_i32_1 = arith.constant 0 : i32
    return %arg0, %c0_i32, %c0_i32_0 : i32, i32, i32
  }
  func.func @transform_3(%arg0: i32) -> (i32, i32) {
    %c0_i32 = arith.constant 0 : i32
    %c0_i32_0 = arith.constant 0 : i32
    %c0_i32_1 = arith.constant 0 : i32
    return %c0_i32, %c0_i32_0 : i32, i32
  }
  func.func @transform_4(%arg0: i32) -> (i32, i32) {
    %c0_i32 = arith.constant 0 : i32
    %c0_i32_0 = arith.constant 0 : i32
    %c0_i32_1 = arith.constant 0 : i32
    return %c0_i32, %c0_i32_0 : i32, i32
  }
  func.func @transform_5(%arg0: i32) -> (i32, i32) {
    %c0_i32 = arith.constant 0 : i32
    %c0_i32_0 = arith.constant 0 : i32
    %c0_i32_1 = arith.constant 0 : i32
    return %c0_i32, %c0_i32_0 : i32, i32
  }
  func.func @transform_6(%arg0: i32) -> (i32, i32) {
    %c0_i32 = arith.constant 0 : i32
    %c0_i32_0 = arith.constant 0 : i32
    return %arg0, %c0_i32 : i32, i32
  }
  func.func @transform_7(%arg0: i32) -> (i32, i32, i32) {
    %c0_i32 = arith.constant 0 : i32
    %c0_i32_0 = arith.constant 0 : i32
    %c0_i32_1 = arith.constant 0 : i32
    return %arg0, %c0_i32, %c0_i32_0 : i32, i32, i32
  }
}

</mosaic_0001>

<bundles_post_ra>
// kernel: tpu_custom_call.1
= control target key start
LH: loop header
LB: loop body
LE: loop exit
PB: predicated region body
PF: predicated region fallthrough
CT: control target
= control target key end

     0   :  { %13 = vsyncpa [#allocation3], 0  ;;  %vm87_vm0 = vcmask 261120   ;;  %s1791_s0 = inlined_call_operand.vmem [shape: f32[16,8,32], index: 0, kind: input, shape index: {}]   ;;  %s1792_s1 = inlined_call_operand.vmem [shape: f32[128,32], index: 1, kind: input, shape index: {}]   ;;  %s1793_s2 = inlined_call_operand.vmem [shape: s32[16,1,1], index: 2, kind: input, shape index: {}]   ;;  %s1794_s3 = inlined_call_operand.vmem [shape: f32[32,16], index: 3, kind: input, shape index: {}]   ;;  %s1795_s4 = inlined_call_operand.vmem [shape: f32[1,16], index: 4, kind: input, shape index: {}]   ;;  %s1796_s5 = inlined_call_operand.vmem [shape: f32[1,16], index: 5, kind: input, shape index: {}]   ;;  %s1797_s6 = inlined_call_operand.hbm [shape: f32[16,32], index: 6, kind: output, shape index: {0}]   ;;  %s1798_s7 = inlined_call_operand.hbm [shape: f32[1,1,128], index: 7, kind: output, shape index: {1}]  }
   0x1   :  { %v75_v0 = vld [vmem:[%s1794_s3] sm:$0xff]  ;;  %v76_v1 = vld [vmem:[%s1794_s3 + $0x8] sm:$0xff]  ;;  %v77_v2 = vld [vmem:[%s1794_s3 + $0x10] sm:$0xff] }
   0x2   :  { %v1105_v3 = vpack.c.bf16 %v76_v1, %v75_v0  ;;  %v78_v4 = vld [vmem:[%s1794_s3 + $0x18] sm:$0xff]  ;;  %v43_v5 = vld [vmem:[%s1792_s1] sm:$0xff] }
   0x3   :  { %v51_v6 = vld [vmem:[%s1792_s1 + $0x40] sm:$0xff]  ;;  %v1109_v7 = vpack.c.bf16 %v78_v4, %v77_v2  ;;  %1081 = vmatprep.mubr.msk.f32.mxu0 %vm87_vm0, %v43_v5 }
   0x4   :  { %1093 = vmatprep.mubr.msk.f32.mxu1 %vm87_vm0, %v51_v6  ;;  %1106 = vmatprep.subr.bf16.mxu0 %v1105_v3 }
   0x5   :  { %1113 = vmatprep.subr.bf16.mxu1 %v1105_v3  ;;  %1108 = vmatpush3.bf16.msra.mxu0 %v1105_v3 }
   0x6   :  { %1115 = vmatpush3.bf16.msra.mxu1 %v1105_v3  ;;  %1110 = vmatprep.subr.bf16.mxu0 %v1109_v7 }
   0x7   :  { %1114 = vmatprep.subr.bf16.mxu1 %v1109_v7 }
   0x8   :  { %14 = vsyncpa [#allocation5], 0  ;;  %v44_v8 = vld [vmem:[%s1792_s1 + $0x8] sm:$0xff]  ;;  %v45_v10 = vld [vmem:[%s1792_s1 + $0x10] sm:$0xff]  ;;  %vm319_vm1 = vcmask 130048   ;;  %vm530_vm6 = vcmask 7168  }
   0x9   :  { %1112 = vmatpush3.bf16.msra.mxu0 %v1109_v7  ;;  %v52_v9 = vld [vmem:[%s1792_s1 + $0x48] sm:$0xff]  ;;  %v53_v11 = vld [vmem:[%s1792_s1 + $0x50] sm:$0xff]  ;;  %v46_v12 = vld [vmem:[%s1792_s1 + $0x18] sm:$0xff] }
   0xa   :  { %1116 = vmatpush3.bf16.msra.mxu1 %v1109_v7  ;;  %v54_v13 = vld [vmem:[%s1792_s1 + $0x58] sm:$0xff]  ;;  %v47_v14 = vld [vmem:[%s1792_s1 + $0x20] sm:$0xff]  ;;  %v48_v16 = vld [vmem:[%s1792_s1 + $0x28] sm:$0xff] }
   0xb   :  { %v55_v15 = vld [vmem:[%s1792_s1 + $0x60] sm:$0xff]  ;;  %v56_v17 = vld [vmem:[%s1792_s1 + $0x68] sm:$0xff]  ;;  %v49_v18 = vld [vmem:[%s1792_s1 + $0x30] sm:$0xff] }
   0xc   :  { %1082 = vmatmul.mubr.msk.f32.vlgmr.msra.gmra.mrb[0].mxu0 %vm87_vm0, %v44_v8  ;;  %v57_v19 = vld [vmem:[%s1792_s1 + $0x70] sm:$0xff]  ;;  %v50_v20 = vld [vmem:[%s1792_s1 + $0x38] sm:$0xff]  ;;  %v1394_v22 = vld [vmem:[%s1795_s4] ss:$0 sm:$0xff] }
   0xd   :  { %1094 = vmatmul.mubr.msk.f32.vlgmr.msra.gmra.mrb[0].mxu1 %vm87_vm0, %v52_v9  ;;  %1084 = vmatprep.mubr.msk.f32.mxu0 %vm87_vm0, %v45_v10  ;;  %v58_v21 = vld [vmem:[%s1792_s1 + $0x78] sm:$0xff]  ;;  %v1409_v45 = vld [vmem:[%s1796_s5] ss:$0 sm:$0xff] }
   0xe   :  { %1096 = vmatprep.mubr.msk.f32.mxu1 %vm87_vm0, %v53_v11 }
  0x10   :  { %1085 = vmatmul.mubr.msk.f32.gmra.mrb[2].mxu0 %vm87_vm0, %v46_v12 }
  0x11   :  { %1097 = vmatmul.mubr.msk.f32.gmra.mrb[2].mxu1 %vm87_vm0, %v54_v13  ;;  %1087 = vmatprep.mubr.msk.f32.mxu0 %vm87_vm0, %v47_v14 }
  0x12   :  { %1099 = vmatprep.mubr.msk.f32.mxu1 %vm87_vm0, %v55_v15 }
  0x14   :  { %1088 = vmatmul.mubr.msk.f32.gmra.mrb[4].mxu0 %vm87_vm0, %v48_v16 }
  0x15   :  { %1100 = vmatmul.mubr.msk.f32.gmra.mrb[4].mxu1 %vm87_vm0, %v56_v17  ;;  %1090 = vmatprep.mubr.msk.f32.mxu0 %vm87_vm0, %v49_v18 }
  0x16   :  { %1102 = vmatprep.mubr.msk.f32.mxu1 %vm87_vm0, %v57_v19 }
  0x18   :  { %1091 = vmatmul.mubr.msk.f32.gmra.mrb[6].mxu0 %vm87_vm0, %v50_v20 }
  0x19   :  { %1103 = vmatmul.mubr.msk.f32.gmra.mrb[6].mxu1 %vm87_vm0, %v58_v21 }
  0xdf   :  { %v1083_v23 = vpop.f32.mrb[0].mxu0 }
  0xe0   :  { %v1095_v24 = vpop.f32.mrb[0].mxu1  ;;  %v208_v25 = vadd.f32 %v1083_v23, %v1394_v22  ;;  %v202_v27 = vpop.f32.mrb[1].mxu0 }
  0xe1   :  { %v248_v26 = vadd.f32 %v1095_v24, %v1394_v22  ;;  %v242_v28 = vpop.f32.mrb[1].mxu1  ;;  %v203_v29 = vadd.f32 %v1394_v22, %v202_v27 }
  0xe2   :  { %v243_v30 = vadd.f32 %v1394_v22, %v242_v28  ;;  %1125 = vtanh.f32 %v208_v25 }
  0xe3   :  { %1127 = vtanh.f32 %v248_v26  ;;  %v1086_v31 = vpop.f32.mrb[2].mxu0 }
  0xe4   :  { %v1098_v32 = vpop.f32.mrb[2].mxu1  ;;  %1129 = vtanh.f32 %v203_v29  ;;  %v218_v33 = vadd.f32 %v1086_v31, %v1394_v22  ;;  %v212_v35 = vpop.f32.mrb[3].mxu0 }
  0xe5   :  { %v258_v34 = vadd.f32 %v1098_v32, %v1394_v22  ;;  %v252_v36 = vpop.f32.mrb[3].mxu1  ;;  %1131 = vtanh.f32 %v243_v30  ;;  %v213_v37 = vadd.f32 %v1394_v22, %v212_v35 }
  0xe6   :  { %v253_v38 = vadd.f32 %v1394_v22, %v252_v36  ;;  %1133 = vtanh.f32 %v218_v33 }
  0xe7   :  { %1135 = vtanh.f32 %v258_v34  ;;  %v1089_v39 = vpop.f32.mrb[4].mxu0 }
  0xe8   :  { %v1101_v40 = vpop.f32.mrb[4].mxu1  ;;  %1137 = vtanh.f32 %v213_v37  ;;  %v228_v41 = vadd.f32 %v1089_v39, %v1394_v22  ;;  %v222_v42 = vpop.f32.mrb[5].mxu0 }
  0xe9   :  { %v262_v43 = vpop.f32.mrb[5].mxu1  ;;  %1139 = vtanh.f32 %v253_v38  ;;  %v268_v44 = vadd.f32 %v1101_v40, %v1394_v22  ;;  %v223_v49 = vadd.f32 %v1394_v22, %v222_v42  ;;  %v1269_v40 = vmov 0  }
  0xea   :  { %1141 = vtanh.f32 %v228_v41  ;;  %v263_v54 = vadd.f32 %v1394_v22, %v262_v43  ;;  %1123 = vset.pattern.permute.xlu1 %v1269_v40  ;;  %1124 = vset.pattern.permute.xlu0 %v1269_v40  ;;  %v368_v41 = vlaneseq }
  0xeb   :  { %v1092_v46 = vpop.f32.mrb[6].mxu0  ;;  %1143 = vtanh.f32 %v268_v44  ;;  %v1022_v44 = vld [vmem:[%s1793_s2 + $0x1] ss:$0 sm:$0xff] }
  0xec   :  { %v1104_v47 = vpop.f32.mrb[6].mxu1  ;;  %v1126_v48 = vpop.eup %1125  ;;  %1145 = vtanh.f32 %v223_v49  ;;  %v238_v8 = vadd.f32 %v1092_v46, %v1394_v22  ;;  %v1449_v42 = vshrl.u32 %v368_v41, 7 }
  0xed   :  { %v232_v50 = vpop.f32.mrb[7].mxu0  ;;  %v272_v51 = vpop.f32.mrb[7].mxu1  ;;  %v304_v53 = vmul.f32 %v1126_v48, %v1409_v45  ;;  %1147 = vtanh.f32 %v263_v54  ;;  %v278_v1 = vadd.f32 %v1104_v47, %v1394_v22  ;;  %v1030_v47 = vld [vmem:[%s1793_s2 + $0x9] ss:$0 sm:$0xff]  ;;  %v1021_v48 = vld [vmem:[%s1793_s2] ss:$0 sm:$0xff] }
  0xee   :  { %v1128_v52 = vpop.eup %1127  ;;  %v233_v63 = vadd.f32 %v1394_v22, %v232_v50  ;;  %v273_v10 = vadd.f32 %v1394_v22, %v272_v51  ;;  %v1029_v50 = vld [vmem:[%s1793_s2 + $0x8] ss:$0 sm:$0xff]  ;;  %vm435_vm2 = vcmp.lt.s32.totalorder %v1449_v42, %v1022_v44  ;;  %vm443_vm3 = vcmp.lt.s32.totalorder %v1449_v42, %v1030_v47  ;;  %v1032_v54 = vld [vmem:[%s1793_s2 + $0xb] ss:$0 sm:$0xff] }
  0xef   :  { %v1130_v55 = vpop.eup %1129  ;;  %v312_v56 = vmul.f32 %v1128_v52, %v1409_v45  ;;  %v323_v58 = vsel %vm319_vm1, %v304_v53, 0.0  ;;  %vm434_vm4 = vcmp.lt.s32.totalorder %v1449_v42, %v1021_v48  ;;  %vm442_vm5 = vcmp.lt.s32.totalorder %v1449_v42, %v1029_v50 }
  0xf0   :  { %v1132_v57 = vpop.eup %1131  ;;  %v303_v59 = vmul.f32 %v1130_v55, %v1409_v45  ;;  %324 = vadd.xlane.f32.xlu0 %v323_v58  ;;  %1149 = vtanh.f32 %v233_v63  ;;  %v1024_v55 = vld [vmem:[%s1793_s2 + $0x3] ss:$0 sm:$0xff]  ;;  %vm445_vm7 = vcmp.lt.s32.totalorder %v1449_v42, %v1032_v54 }
  0xf1   :  { %v1134_v60 = vpop.eup %1133  ;;  %v347_v61 = vsel %vm319_vm1, %v312_v56, 0.0  ;;  %v311_v62 = vmul.f32 %v1132_v57, %v1409_v45  ;;  %1151 = vtanh.f32 %v278_v1  ;;  %v1270_v57 = vmov 0.0   ;;  %v1031_v1 = vld [vmem:[%s1793_s2 + $0xa] ss:$0 sm:$0xff] }
  0xf2   :  { %v1136_v0 = vpop.eup %1135  ;;  %348 = vadd.xlane.f32.xlu1 %v347_v61  ;;  %v306_v2 = vmul.f32 %v1134_v60, %v1409_v45  ;;  %v320_v7 = vsel %vm319_vm1, %v303_v59, 0.0  ;;  %1153 = vtanh.f32 %v238_v8  ;;  %v1038_v58 = vsel %vm435_vm2, 1.0, %v1270_v57  ;;  %v1023_v59 = vld [vmem:[%s1793_s2 + $0x2] ss:$0 sm:$0xff]  ;;  %v1035_v8 = vld [vmem:[%s1793_s2 + $0xe] ss:$0 sm:$0xff] }
  0xf3   :  { %v1138_v3 = vpop.eup %1137  ;;  %v344_v4 = vsel %vm319_vm1, %v311_v62, 0.0  ;;  %v314_v5 = vmul.f32 %v1136_v0, %v1409_v45  ;;  %1155 = vtanh.f32 %v273_v10  ;;  %v1046_v60 = vsel %vm443_vm3, 1.0, %v1270_v57  ;;  %v1034_v62 = vld [vmem:[%s1793_s2 + $0xd] ss:$0 sm:$0xff] }
  0xf4   :  { %v1140_v6 = vpop.eup %1139  ;;  %321 = vadd.xlane.f32.xlu0 %v320_v7  ;;  %v329_v9 = vsel %vm319_vm1, %v306_v2, 0.0  ;;  %v305_v11 = vmul.f32 %v1138_v3, %v1409_v45  ;;  %v1037_v61 = vsel %vm434_vm4, 1.0, %v1270_v57  ;;  %v1045_v0 = vsel %vm442_vm5, 1.0, %v1270_v57  ;;  %v1026_v2 = vld [vmem:[%s1793_s2 + $0x5] ss:$0 sm:$0xff] }
  0xf5   :  { %v1142_v12 = vpop.eup %1141  ;;  %v353_v13 = vsel %vm319_vm1, %v314_v5, 0.0  ;;  %v313_v14 = vmul.f32 %v1140_v6, %v1409_v45  ;;  %vm437_vm8 = vcmp.lt.s32.totalorder %v1449_v42, %v1024_v55  ;;  %vm436_vm9 = vcmp.lt.s32.totalorder %v1449_v42, %v1023_v59  ;;  %v1025_v5 = vld [vmem:[%s1793_s2 + $0x4] ss:$0 sm:$0xff]  ;;  %v1033_v6 = vld [vmem:[%s1793_s2 + $0xc] ss:$0 sm:$0xff] }
  0xf6   :  { %345 = vadd.xlane.f32.xlu1 %v344_v4  ;;  %v1144_v15 = vpop.eup %1143  ;;  %v326_v16 = vsel %vm319_vm1, %v305_v11, 0.0  ;;  %v308_v17 = vmul.f32 %v1142_v12, %v1409_v45  ;;  %vm447_vm10 = vcmp.lt.s32.totalorder %v1449_v42, %v1034_v62  ;;  %v1506_v10 = vsel %vm445_vm7, 1.0, %v1270_v57  ;;  %v1036_v12 = vld [vmem:[%s1793_s2 + $0xf] ss:$0 sm:$0xff] }
  0xf7   :  { %v1146_v18 = vpop.eup %1145  ;;  %v350_v19 = vsel %vm319_vm1, %v313_v14, 0.0  ;;  %v316_v20 = vmul.f32 %v1144_v15, %v1409_v45  ;;  %v1040_v11 = vsel %vm437_vm8, 1.0, %v1270_v57  ;;  %vm444_vm11 = vcmp.lt.s32.totalorder %v1449_v42, %v1031_v1 }
  0xf8   :  { %330 = vadd.xlane.f32.xlu0 %v329_v9  ;;  %v1148_v21 = vpop.eup %1147  ;;  %v335_v22 = vsel %vm319_vm1, %v308_v17, 0.0  ;;  %v307_v23 = vmul.f32 %v1146_v18, %v1409_v45  ;;  %v1027_v9 = vld [vmem:[%s1793_s2 + $0x6] ss:$0 sm:$0xff]  ;;  %v1514_v14 = vsel %vm436_vm9, 1.0, %v1270_v57  ;;  %vm439_vm12 = vcmp.lt.s32.totalorder %v1449_v42, %v1026_v2 }
  0xf9   :  { %v359_v25 = vsel %vm319_vm1, %v316_v20, 0.0  ;;  %v315_v26 = vmul.f32 %v1148_v21, %v1409_v45  ;;  %vm438_vm13 = vcmp.lt.s32.totalorder %v1449_v42, %v1025_v5  ;;  %v1519_v17 = vsel %vm447_vm10, 1.0, %v1270_v57 }
  0xfa   :  { %354 = vadd.xlane.f32.xlu1 %v353_v13  ;;  %v1150_v24 = vpop.eup %1149  ;;  %v332_v28 = vsel %vm319_vm1, %v307_v23, 0.0  ;;  %vm448_vm14 = vcmp.lt.s32.totalorder %v1449_v42, %v1035_v8  ;;  %vm446_vm15 = vcmp.lt.s32.totalorder %v1449_v42, %v1033_v6  ;;  %v1529_v21 = vsel %vm444_vm11, 1.0, %v1270_v57 }
  0xfb   :  { %v1152_v27 = vpop.eup %1151  ;;  %v309_v29 = vmul.f32 %v1150_v24, %v1409_v45  ;;  %v356_v31 = vsel %vm319_vm1, %v315_v26, 0.0  ;;  %vm449_vm2 = vcmp.lt.s32.totalorder %v1449_v42, %v1036_v12  ;;  %v1545_v26 = vsel %vm438_vm13, 1.0, %v1270_v57 }
  0xfc   :  { %327 = vadd.xlane.f32.xlu0 %v326_v16  ;;  %v1154_v30 = vpop.eup %1153  ;;  %v318_v32 = vmul.f32 %v1152_v27, %v1409_v45  ;;  %vm915_vm4 = vcmask 1041409   ;;  %vm917_vm5 = vcmask 1042434   ;;  %vm921_vm7 = vcmask 1044484  }
  0xfd   :  { %v1156_v33 = vpop.eup %1155  ;;  %v338_v34 = vsel %vm319_vm1, %v309_v29, 0.0  ;;  %v310_v35 = vmul.f32 %v1154_v30, %v1409_v45  ;;  %v1550_v29 = vsel %vm448_vm14, 1.0, %v1270_v57  ;;  %v1553_v30 = vsel %vm446_vm15, 1.0, %v1270_v57 }
  0xfe   :  { %351 = vadd.xlane.f32.xlu1 %v350_v19  ;;  %v365_v36 = vsel %vm319_vm1, %v318_v32, 0.0  ;;  %v317_v37 = vmul.f32 %v1156_v33, %v1409_v45  ;;  %vm925_vm8 = vcmask 1046534   ;;  %vm923_vm9 = vcmask 1045509  }
  0xff   :  { %v341_v38 = vsel %vm319_vm1, %v310_v35, 0.0  ;;  %vm927_vm10 = vcmask 1047559  }
 0x100   :  { %336 = vadd.xlane.f32.xlu0 %v335_v22  ;;  %v362_v39 = vsel %vm319_vm1, %v317_v37, 0.0  ;;  %vm440_vm1 = vcmp.lt.s32.totalorder %v1449_v42, %v1027_v9  ;;  %v1028_v22 = vld [vmem:[%s1793_s2 + $0x7] ss:$0 sm:$0xff] }
 0x101   :  { %vm441_vm3 = vcmp.lt.s32.totalorder %v1449_v42, %v1028_v22 }
 0x102   :  { %360 = vadd.xlane.f32.xlu1 %v359_v25  ;;  %v1540_v25 = vsel %vm439_vm12, 1.0, %v1270_v57  ;;  %v1571_v48 = vsel %vm441_vm3, 1.0, %v1270_v57 }
 0x104   :  { %333 = vadd.xlane.f32.xlu0 %v332_v28 }
 0x106   :  { %357 = vadd.xlane.f32.xlu1 %v356_v31  ;;  %v1556_v31 = vsel %vm440_vm1, 1.0, %v1270_v57 }
 0x108   :  { %339 = vadd.xlane.f32.xlu0 %v338_v34 }
 0x10a   :  { %366 = vadd.xlane.f32.xlu1 %v365_v36  ;;  %v1561_v36 = vsel %vm449_vm2, 1.0, %v1270_v57 }
 0x10c   :  { %342 = vadd.xlane.f32.xlu0 %v341_v38 }
 0x10e   :  { %363 = vadd.xlane.f32.xlu1 %v362_v39 }
 0x17d   :  { %v325_v43 = vpop.xlane.xlu0 %324 }
 0x17e   :  { %v484_v46 = vmul.f32 1.442695, %v325_v43 }
 0x17f   :  { %v349_v45 = vpop.xlane.xlu1 %348 }
 0x180   :  { %v500_v49 = vmul.f32 1.442695, %v349_v45  ;;  %1157 = vpow2.f32 %v484_v46 }
 0x181   :  { %v322_v51 = vpop.xlane.xlu0 %321 }
 0x182   :  { %1159 = vpow2.f32 %v500_v49  ;;  %v482_v53 = vmul.f32 1.442695, %v322_v51 }
 0x183   :  { %v346_v52 = vpop.xlane.xlu1 %345 }
 0x184   :  { %v498_v56 = vmul.f32 1.442695, %v346_v52  ;;  %1161 = vpow2.f32 %v482_v53 }
 0x185   :  { %v331_v63 = vpop.xlane.xlu0 %330 }
 0x186   :  { %1163 = vpow2.f32 %v498_v56  ;;  %v488_v4 = vmul.f32 1.442695, %v331_v63 }
 0x187   :  { %v355_v3 = vpop.xlane.xlu1 %354 }
 0x188   :  { %v504_v7 = vmul.f32 1.442695, %v355_v3  ;;  %1165 = vpow2.f32 %v488_v4 }
 0x189   :  { %v328_v13 = vpop.xlane.xlu0 %327 }
 0x18a   :  { %1167 = vpow2.f32 %v504_v7  ;;  %v1158_v15 = vpop.eup %1157  ;;  %v486_v19 = vmul.f32 1.442695, %v328_v13 }
 0x18b   :  { %v352_v16 = vpop.xlane.xlu1 %351  ;;  %v1524_v20 = vmul.f32 %v1158_v15, %v1038_v58 }
 0x18c   :  { %v1160_v18 = vpop.eup %1159  ;;  %v502_v23 = vmul.f32 1.442695, %v352_v16  ;;  %1169 = vpow2.f32 %v486_v19 }
 0x18d   :  { %v1535_v24 = vmul.f32 %v1160_v18, %v1046_v60  ;;  %v337_v27 = vpop.xlane.xlu0 %336  ;;  %v538_v28 = vsel %vm530_vm6, %v1524_v20, 0.0 }
 0x18e   :  { %v1162_v32 = vpop.eup %1161  ;;  %v539_v34 = vrot.slane %v538_v28, 4  ;;  %1171 = vpow2.f32 %v502_v23  ;;  %v492_v41 = vmul.f32 1.442695, %v337_v27 }
 0x18f   :  { %v361_v33 = vpop.xlane.xlu1 %360  ;;  %v594_v35 = vsel %vm530_vm6, %v1535_v24, 0.0  ;;  %v1564_v40 = vmul.f32 %v1162_v32, %v1037_v61 }
 0x190   :  { %v1164_v37 = vpop.eup %1163  ;;  %v508_v38 = vmul.f32 1.442695, %v361_v33  ;;  %v595_v39 = vrot.slane %v594_v35, 4  ;;  %v540_v43 = vadd.f32 %v539_v34, %v538_v28 }
 0x191   :  { %v1566_v44 = vmul.f32 %v1164_v37, %v1045_v0  ;;  %v334_v45 = vpop.xlane.xlu0 %333  ;;  %v531_v47 = vsel %vm530_vm6, %v1564_v40, 0.0 }
 0x192   :  { %1173 = vpow2.f32 %v508_v38  ;;  %v596_v46 = vadd.f32 %v595_v39, %v594_v35  ;;  %v1166_v42 = vpop.eup %1165  ;;  %v490_v50 = vmul.f32 1.442695, %v334_v45  ;;  %v541_v51 = vrot.slane %v540_v43, 2 }
 0x193   :  { %v358_v49 = vpop.xlane.xlu1 %357  ;;  %v532_v52 = vrot.slane %v531_v47, 4  ;;  %v587_v53 = vsel %vm530_vm6, %v1566_v44, 0.0  ;;  %v1575_v59 = vmul.f32 %v1166_v42, %v1040_v11  ;;  %1175 = vpow2.f32 %v492_v41 }
 0x194   :  { %v1168_v54 = vpop.eup %1167  ;;  %v506_v55 = vmul.f32 1.442695, %v358_v49  ;;  %v597_v56 = vrot.slane %v596_v46, 2  ;;  %v588_v58 = vrot.slane %v587_v53, 4  ;;  %v542_v60 = vadd.f32 %v541_v51, %v540_v43 }
 0x195   :  { %v533_v61 = vadd.f32 %v532_v52, %v531_v47  ;;  %v1578_v57 = vmul.f32 %v1168_v54, %v1506_v10  ;;  %1177 = vpow2.f32 %v490_v50  ;;  %v340_v62 = vpop.xlane.xlu0 %339  ;;  %v552_v1 = vsel %vm530_vm6, %v1575_v59, 0.0 }
 0x196   :  { %v598_v63 = vadd.f32 %v597_v56, %v596_v46  ;;  %v589_v0 = vadd.f32 %v588_v58, %v587_v53  ;;  %1179 = vpow2.f32 %v506_v55  ;;  %v543_v3 = vrot.slane %v542_v60, 1  ;;  %v1170_v15 = vpop.eup %1169 }
 0x197   :  { %v367_v2 = vpop.xlane.xlu1 %366  ;;  %v534_v4 = vrot.slane %v533_v61, 2  ;;  %v608_v5 = vsel %vm530_vm6, %v1578_v57, 0.0  ;;  %v1584_v10 = vmul.f32 1.442695, %v340_v62  ;;  %v553_v13 = vrot.slane %v552_v1, 4 }
 0x198   :  { %v512_v6 = vmul.f32 1.442695, %v367_v2  ;;  %v599_v7 = vrot.slane %v598_v63, 1  ;;  %v590_v8 = vrot.slane %v589_v0, 2  ;;  %v609_v9 = vrot.slane %v608_v5, 4  ;;  %v1172_v23 = vpop.eup %1171 }
 0x199   :  { %v544_v11 = vadd.f32 %v543_v3, %v542_v60  ;;  %v535_v12 = vadd.f32 %v534_v4, %v533_v61  ;;  %v343_v16 = vpop.xlane.xlu0 %342  ;;  %v554_v34 = vadd.f32 %v553_v13, %v552_v1  ;;  %v1590_v49 = vmul.f32 %v1170_v15, %v1514_v14 }
 0x19a   :  { %1181 = vpow2.f32 %v512_v6  ;;  %v600_v18 = vadd.f32 %v599_v7, %v598_v63  ;;  %v591_v19 = vadd.f32 %v590_v8, %v589_v0  ;;  %v610_v22 = vadd.f32 %v609_v9, %v608_v5 }
 0x19b   :  { %v364_v27 = vpop.xlane.xlu1 %363  ;;  %v496_v28 = vmul.f32 1.442695, %v343_v16  ;;  %v644_v32 = vadd.f32 0.0001, %v544_v11  ;;  %v536_v33 = vrot.slane %v535_v12, 1  ;;  %v555_v45 = vrot.slane %v554_v34, 2 }
 0x19c   :  { %v1174_v35 = vpop.eup %1173  ;;  %v510_v37 = vmul.f32 1.442695, %v364_v27  ;;  %v652_v38 = vadd.f32 0.0001, %v600_v18  ;;  %v592_v39 = vrot.slane %v591_v19, 1  ;;  %v611_v41 = vrot.slane %v610_v22, 2 }
 0x19d   :  { %1183 = vpow2.f32 %v496_v28  ;;  %v537_v43 = vadd.f32 %v536_v33, %v535_v12  ;;  %v1587_v46 = vmul.f32 %v1174_v35, %v1519_v17  ;;  %v1176_v50 = vpop.eup %1175  ;;  %v556_v52 = vadd.f32 %v555_v45, %v554_v34 }
 0x19e   :  { %1185 = vpow2.f32 %v510_v37  ;;  %v593_v47 = vadd.f32 %v592_v39, %v591_v19  ;;  %v612_v42 = vadd.f32 %v611_v41, %v610_v22  ;;  %v545_v61 = vsel %vm530_vm6, %v1590_v49, 0.0 }
 0x19f   :  { %1187 = vrcp.f32 %v644_v32  ;;  %v643_v51 = vadd.f32 0.0001, %v537_v43  ;;  %v622_v53 = vsel %vm530_vm6, %v1587_v46, 0.0  ;;  %v1178_v54 = vpop.eup %1177  ;;  %v557_v60 = vrot.slane %v556_v52, 1 }
 0x1a0   :  { %1189 = vrcp.f32 %v652_v38  ;;  %v651_v55 = vadd.f32 0.0001, %v593_v47  ;;  %v613_v56 = vrot.slane %v612_v42, 1  ;;  %v623_v58 = vrot.slane %v622_v53, 4  ;;  %v1180_v17 = vpop.eup %1179 }
 0x1a1   :  { %1191 = vrcp.f32 %v643_v51  ;;  %v1597_v14 = vmul.f32 %v1172_v23, %v1529_v21  ;;  %v546_v0 = vrot.slane %v545_v61, 4  ;;  %v558_v1 = vadd.f32 %v557_v60, %v556_v52 }
 0x1a2   :  { %1193 = vrcp.f32 %v651_v55  ;;  %v614_v62 = vadd.f32 %v613_v56, %v612_v42  ;;  %v624_v63 = vadd.f32 %v623_v58, %v622_v53  ;;  %v1602_v3 = vmul.f32 %v1176_v50, %v1540_v25 }
 0x1a3   :  { %v601_v2 = vsel %vm530_vm6, %v1597_v14, 0.0  ;;  %v1605_v4 = vmul.f32 %v1178_v54, %v1545_v26  ;;  %v547_v8 = vadd.f32 %v546_v0, %v545_v61  ;;  %v646_v9 = vadd.f32 0.0001, %v558_v1 }
 0x1a4   :  { %v1182_v5 = vpop.eup %1181  ;;  %v654_v6 = vadd.f32 0.0001, %v614_v62  ;;  %v625_v7 = vrot.slane %v624_v63, 2  ;;  %v602_v21 = vrot.slane %v601_v2, 4  ;;  %v566_v11 = vsel %vm530_vm6, %v1602_v3, 0.0 }
 0x1a5   :  { %v559_v12 = vsel %vm530_vm6, %v1605_v4, 0.0  ;;  %v1612_v13 = vmul.f32 %v1182_v5, %v1561_v36  ;;  %v548_v15 = vrot.slane %v547_v8, 2  ;;  %v567_v18 = vrot.slane %v566_v11, 4 }
 0x1a6   :  { %1195 = vrcp.f32 %v654_v6  ;;  %v626_v25 = vadd.f32 %v625_v7, %v624_v63  ;;  %v603_v26 = vadd.f32 %v602_v21, %v601_v2  ;;  %v560_v19 = vrot.slane %v559_v12, 4 }
 0x1a7   :  { %v1614_v16 = vpop.eup %1183  ;;  %1197 = vpow2.f32 %v1584_v10  ;;  %v636_v22 = vsel %vm530_vm6, %v1612_v13, 0.0  ;;  %v549_v28 = vadd.f32 %v548_v15, %v547_v8  ;;  %v568_v33 = vadd.f32 %v567_v18, %v566_v11 }
 0x1a8   :  { %v1186_v23 = vpop.eup %1185  ;;  %1199 = vrcp.f32 %v646_v9  ;;  %v627_v27 = vrot.slane %v626_v25, 1  ;;  %v604_v32 = vrot.slane %v603_v26, 2  ;;  %v561_v35 = vadd.f32 %v560_v19, %v559_v12 }
 0x1a9   :  { %v1188_v36 = vpop.eup %1187  ;;  %v1620_v34 = vmul.f32 %v1186_v23, %v1550_v29  ;;  %v637_v37 = vrot.slane %v636_v22, 4  ;;  %v550_v41 = vrot.slane %v549_v28, 1  ;;  %v569_v47 = vrot.slane %v568_v33, 2 }
 0x1aa   :  { %v1190_v38 = vpop.eup %1189  ;;  %v1623_v10 = vmul.f32 %v1188_v36, %v1524_v20  ;;  %v628_v39 = vadd.f32 %v627_v27, %v626_v25  ;;  %v605_v43 = vadd.f32 %v604_v32, %v603_v26  ;;  %v562_v50 = vrot.slane %v561_v35, 2 }
 0x1ab   :  { %v1192_v45 = vpop.eup %1191  ;;  %v629_v42 = vsel %vm530_vm6, %v1620_v34, 0.0  ;;  %v1628_v51 = vmul.f32 %v1180_v17, %v1553_v30  ;;  %v551_v53 = vadd.f32 %v550_v41, %v549_v28  ;;  %v1635_v55 = vmul.f32 %v1190_v38, %v1535_v24 }
 0x1ac   :  { %v1194_v29 = vpop.eup %1193  ;;  %698 = vperm.xlu1 %1123, %v1623_v10   ;;  %v1632_v52 = vmul.f32 %v1192_v45, %v1564_v40  ;;  %v656_v20 = vadd.f32 0.0001, %v628_v39  ;;  %v606_v54 = vrot.slane %v605_v43, 1  ;;  %v570_v56 = vadd.f32 %v569_v47, %v568_v33 }
 0x1ad   :  { %v630_v58 = vrot.slane %v629_v42, 4  ;;  %v563_v60 = vadd.f32 %v562_v50, %v561_v35  ;;  %v645_v30 = vadd.f32 0.0001, %v551_v53  ;;  %v638_v61 = vadd.f32 %v637_v37, %v636_v22 }
 0x1ae   :  { %693 = vperm.xlu0 %1124, %v1632_v52   ;;  %1201 = vrcp.f32 %v656_v20  ;;  %v607_v17 = vadd.f32 %v606_v54, %v605_v43  ;;  %v571_v62 = vrot.slane %v570_v56, 1  ;;  %v615_v40 = vsel %vm530_vm6, %v1628_v51, 0.0 }
 0x1af   :  { %v631_v63 = vadd.f32 %v630_v58, %v629_v42  ;;  %v564_v0 = vrot.slane %v563_v60, 1  ;;  %1203 = vrcp.f32 %v645_v30  ;;  %v639_v2 = vrot.slane %v638_v61, 2 }
 0x1b0   :  { %v1196_v1 = vpop.eup %1195  ;;  %738 = vperm.xlu1 %1123, %v1635_v55   ;;  %v653_v24 = vadd.f32 0.0001, %v607_v17  ;;  %v616_v5 = vrot.slane %v615_v40, 4  ;;  %v572_v8 = vadd.f32 %v571_v62, %v570_v56  ;;  %v1645_v12 = vmul.f32 %v1194_v29, %v1566_v44 }
 0x1b1   :  { %v1198_v6 = vpop.eup %1197  ;;  %v1642_v7 = vmul.f32 %v1196_v1, %v1578_v57  ;;  %v632_v21 = vrot.slane %v631_v63, 2  ;;  %v565_v9 = vadd.f32 %v564_v0, %v563_v60  ;;  %v640_v25 = vadd.f32 %v639_v2, %v638_v61 }
 0x1b2   :  { %v1200_v11 = vpop.eup %1199  ;;  %1205 = vrcp.f32 %v653_v24  ;;  %v617_v15 = vadd.f32 %v616_v5, %v615_v40  ;;  %v648_v26 = vadd.f32 0.0001, %v572_v8  ;;  %v1650_v19 = vmul.f32 %v1614_v16, %v1571_v48 }
 0x1b3   :  { %748 = vperm.xlu0 %1124, %v1642_v7   ;;  %v633_v18 = vadd.f32 %v632_v21, %v631_v63  ;;  %v641_v57 = vrot.slane %v640_v25, 1  ;;  %v1654_v23 = vmul.f32 %v1198_v6, %v1556_v31  ;;  %v1657_v44 = vmul.f32 %v1200_v11, %v1575_v59 }
 0x1b4   :  { %733 = vperm.xlu1 %1123, %v1645_v12   ;;  %v618_v22 = vrot.slane %v617_v15, 2  ;;  %v647_v28 = vadd.f32 0.0001, %v565_v9  ;;  %v580_v32 = vsel %vm530_vm6, %v1650_v19, 0.0  ;;  %1207 = vrcp.f32 %v648_v26 }
 0x1b5   :  { %v634_v27 = vrot.slane %v633_v18, 1  ;;  %v642_v36 = vadd.f32 %v641_v57, %v640_v25  ;;  %v581_v48 = vrot.slane %v580_v32, 4  ;;  %v573_v35 = vsel %vm530_vm6, %v1654_v23, 0.0  ;;  %v35_v25 = vld [vmem:[%s1791_s0 + $0x40] sm:$0xff] }
 0x1b6   :  { %v619_v33 = vadd.f32 %v618_v22, %v617_v15  ;;  %v574_v39 = vrot.slane %v573_v35, 4  ;;  %1209 = vrcp.f32 %v647_v28  ;;  %vm919_vm6 = vcmask 1043459  }
 0x1b7   :  { %v635_v16 = vadd.f32 %v634_v27, %v633_v18  ;;  %v658_v31 = vadd.f32 0.0001, %v642_v36  ;;  %v582_v59 = vadd.f32 %v581_v48, %v580_v32  ;;  %v38_v32 = vld [vmem:[%s1791_s0 + $0x58] sm:$0xff]  ;;  %v29_v48 = vld [vmem:[%s1791_s0 + $0x10] sm:$0xff] }
 0x1b8   :  { %v1202_v37 = vpop.eup %1201  ;;  %708 = vperm.xlu1 %1123, %v1657_v44   ;;  %v620_v38 = vrot.slane %v619_v33, 1  ;;  %v575_v50 = vadd.f32 %v574_v39, %v573_v35 }
 0x1b9   :  { %v1665_v41 = vmul.f32 %v1202_v37, %v1587_v46  ;;  %v657_v43 = vadd.f32 0.0001, %v635_v16  ;;  %v1204_v45 = vpop.eup %1203  ;;  %1211 = vrcp.f32 %v658_v31  ;;  %v583_v42 = vrot.slane %v582_v59, 2  ;;  %v40_v37 = vld [vmem:[%s1791_s0 + $0x68] sm:$0xff] }
 0x1ba   :  { %v621_v47 = vadd.f32 %v620_v38, %v619_v33  ;;  %v664_v29 = vmul.f32 %v1204_v45, %v1590_v49  ;;  %v576_v56 = vrot.slane %v575_v50, 2  ;;  %v30_v33 = vld [vmem:[%s1791_s0 + $0x18] sm:$0xff] }
 0x1bb   :  { %758 = vperm.xlu0 %1124, %v1665_v41   ;;  %1213 = vrcp.f32 %v657_v43  ;;  %v584_v54 = vadd.f32 %v583_v42, %v582_v59  ;;  %v37_v42 = vld [vmem:[%s1791_s0 + $0x50] sm:$0xff] }
 0x1bc   :  { %v1206_v20 = vpop.eup %1205  ;;  %v655_v53 = vadd.f32 0.0001, %v621_v47  ;;  %703 = vperm.xlu1 %1123, %v664_v29   ;;  %v577_v58 = vadd.f32 %v576_v56, %v575_v50 }
 0x1bd   :  { %v585_v46 = vrot.slane %v584_v54, 1  ;;  %v680_v60 = vmul.f32 %v1206_v20, %v1597_v14 }
 0x1be   :  { %1215 = vrcp.f32 %v655_v53  ;;  %v1208_v30 = vpop.eup %1207  ;;  %v578_v61 = vrot.slane %v577_v58, 1 }
 0x1bf   :  { %v586_v17 = vadd.f32 %v585_v46, %v584_v54  ;;  %v670_v49 = vmul.f32 %v1208_v30, %v1602_v3 }
 0x1c0   :  { %743 = vperm.xlu1 %1123, %v680_v60   ;;  %v579_v63 = vadd.f32 %v578_v61, %v577_v58  ;;  %v1210_v0 = vpop.eup %1209  ;;  %v32_v61 = vld [vmem:[%s1791_s0 + $0x28] sm:$0xff] }
 0x1c1   :  { %v650_v62 = vadd.f32 0.0001, %v586_v17  ;;  %v668_v5 = vmul.f32 %v1210_v0, %v1605_v4 }
 0x1c2   :  { %v649_v1 = vadd.f32 0.0001, %v579_v63 }
 0x1c3   :  { %v1212_v40 = vpop.eup %1211  ;;  %1217 = vrcp.f32 %v650_v62 }
 0x1c4   :  { %718 = vperm.xlu1 %1123, %v670_v49   ;;  %1219 = vrcp.f32 %v649_v1  ;;  %v690_v6 = vmul.f32 %v1212_v40, %v1612_v13  ;;  %v28_v13 = vld [vmem:[%s1791_s0 + $0x8] sm:$0xff] }
 0x1c5   :  { %v1214_v24 = vpop.eup %1213 }
 0x1c6   :  { %v688_v2 = vmul.f32 %v1214_v24, %v1620_v34 }
 0x1c8   :  { %v1216_v14 = vpop.eup %1215  ;;  %763 = vperm.xlu0 %1124, %v688_v2   ;;  %713 = vperm.xlu1 %1123, %v668_v5  }
 0x1c9   :  { %v684_v8 = vmul.f32 %v1216_v14, %v1628_v51 }
 0x1cc   :  { %768 = vperm.xlu0 %1124, %v690_v6   ;;  %753 = vperm.xlu1 %1123, %v684_v8  }
 0x1cd   :  { %v1218_v3 = vpop.eup %1217 }
 0x1ce   :  { %v674_v21 = vmul.f32 %v1218_v3, %v1650_v19  ;;  %v1220_v9 = vpop.eup %1219 }
 0x1cf   :  { %v672_v11 = vmul.f32 %v1220_v9, %v1654_v23  ;;  %v31_v9 = vld [vmem:[%s1791_s0 + $0x20] sm:$0xff] }
 0x1d0   :  { %728 = vperm.xlu1 %1123, %v674_v21  }
 0x1d4   :  { %723 = vperm.xlu1 %1123, %v672_v11  }
 0x1fd   :  { %940 = vxpose.xlu1.b32.start [1/16] (narrow) %v1632_v52, 8  ;;  %v27_v52 = vld [vmem:[%s1791_s0] sm:$0xff] }
 0x201   :  { %941 = vxpose.xlu1.b32.cont [2/16] (narrow) %v1623_v10, 8 }
 0x205   :  { %942 = vxpose.xlu1.b32.cont [3/16] (narrow) %v664_v29, 8 }
 0x209   :  { %943 = vxpose.xlu1.b32.cont [4/16] (narrow) %v1657_v44, 8 }
 0x20d   :  { %944 = vxpose.xlu1.b32.cont [5/16] (narrow) %v668_v5, 8 }
 0x211   :  { %945 = vxpose.xlu1.b32.cont [6/16] (narrow) %v670_v49, 8 }
 0x215   :  { %946 = vxpose.xlu1.b32.cont [7/16] (narrow) %v672_v11, 8 }
 0x219   :  { %947 = vxpose.xlu1.b32.cont [8/16] (narrow) %v674_v21, 8 }
 0x21d   :  { %948 = vxpose.xlu1.b32.cont [9/16] (narrow) %v1645_v12, 8 }
 0x221   :  { %949 = vxpose.xlu1.b32.cont [10/16] (narrow) %v1635_v55, 8 }
 0x225   :  { %950 = vxpose.xlu1.b32.cont [11/16] (narrow) %v680_v60, 8 }
 0x229   :  { %951 = vxpose.xlu1.b32.cont [12/16] (narrow) %v1642_v7, 8  ;;  %v36_v7 = vld [vmem:[%s1791_s0 + $0x48] sm:$0xff] }
 0x22b   :  { %v699_v4 = vpop.permute.xlu1 %698 }
 0x22c   :  { %v772_v34 = vmul.f32 %v699_v4, %v28_v13 }
 0x22d   :  { %952 = vxpose.xlu1.b32.cont [13/16] (narrow) %v684_v8, 8  ;;  %v694_v51 = vpop.permute.xlu0 %693 }
 0x22e   :  { %v794_v55 = vsel %vm87_vm0, %v772_v34, 0.0  ;;  %v771_v15 = vmul.f32 %v694_v51, %v27_v52 }
 0x22f   :  { %v739_v10 = vpop.permute.xlu1 %738  ;;  %v795_v26 = vrot.slane %v794_v55, 4 }
 0x230   :  { %v780_v18 = vmul.f32 %v739_v10, %v36_v7  ;;  %v787_v22 = vsel %vm87_vm0, %v771_v15, 0.0 }
 0x231   :  { %953 = vxpose.xlu1.b32.cont [14/16] (narrow) %v1665_v41, 8  ;;  %v796_v44 = vadd.f32 %v795_v26, %v794_v55  ;;  %v788_v36 = vrot.slane %v787_v22, 4 }
 0x232   :  { %v749_v23 = vpop.permute.xlu0 %748  ;;  %v850_v27 = vsel %vm87_vm0, %v780_v18, 0.0 }
 0x233   :  { %v734_v12 = vpop.permute.xlu1 %733  ;;  %v851_v31 = vrot.slane %v850_v27, 4  ;;  %v782_v59 = vmul.f32 %v749_v23, %v38_v32  ;;  %v797_v39 = vrot.slane %v796_v44, 2  ;;  %v789_v45 = vadd.f32 %v788_v36, %v787_v22 }
 0x234   :  { %v779_v19 = vmul.f32 %v734_v12, %v35_v25  ;;  %v42_v12 = vld [vmem:[%s1791_s0 + $0x78] sm:$0xff] }
 0x235   :  { %954 = vxpose.xlu1.b32.cont [15/16] (narrow) %v688_v2, 8  ;;  %v852_v20 = vadd.f32 %v851_v31, %v850_v27  ;;  %v864_v54 = vsel %vm87_vm0, %v782_v59, 0.0  ;;  %v798_v56 = vadd.f32 %v797_v39, %v796_v44  ;;  %v790_v60 = vrot.slane %v789_v45, 2  ;;  %v41_v2 = vld [vmem:[%s1791_s0 + $0x70] sm:$0xff]  ;;  %v39_v44 = vld [vmem:[%s1791_s0 + $0x60] sm:$0xff] }
 0x236   :  { %v843_v28 = vsel %vm87_vm0, %v779_v19, 0.0  ;;  %v865_v62 = vrot.slane %v864_v54, 4 }
 0x237   :  { %v709_v57 = vpop.permute.xlu1 %708  ;;  %v844_v38 = vrot.slane %v843_v28, 4  ;;  %v853_v49 = vrot.slane %v852_v20, 2  ;;  %v799_v5 = vrot.slane %v798_v56, 1  ;;  %v791_v8 = vadd.f32 %v790_v60, %v789_v45 }
 0x238   :  { %v774_v41 = vmul.f32 %v709_v57, %v30_v33  ;;  %v866_v4 = vadd.f32 %v865_v62, %v864_v54 }
 0x239   :  { %955 = vxpose.xlu1.b32.end [16/16] (narrow) %v690_v6, 8  ;;  %v845_v53 = vadd.f32 %v844_v38, %v843_v28  ;;  %v854_v51 = vadd.f32 %v853_v49, %v852_v20  ;;  %v1733_v25 = vadd.f32 %v799_v5, %v798_v56  ;;  %v792_v19 = vrot.slane %v791_v8, 1 }
 0x23a   :  { %v759_v35 = vpop.permute.xlu0 %758  ;;  %v808_v46 = vsel %vm87_vm0, %v774_v41, 0.0  ;;  %v867_v28 = vrot.slane %v866_v4, 2 }
 0x23b   :  { %v704_v16 = vpop.permute.xlu1 %703  ;;  %v784_v47 = vmul.f32 %v759_v35, %v40_v37  ;;  %v846_v40 = vrot.slane %v845_v53, 2  ;;  %v809_v1 = vrot.slane %v808_v46, 4 }
 0x23c   :  { %v773_v43 = vmul.f32 %v704_v16, %v29_v48  ;;  %v855_v16 = vrot.slane %v854_v51, 1  ;;  %v868_v20 = vadd.f32 %v867_v28, %v866_v4 }
 0x23d   :  { %v878_v17 = vsel %vm87_vm0, %v784_v47, 0.0  ;;  %v847_v52 = vadd.f32 %v846_v40, %v845_v53  ;;  %v810_v55 = vadd.f32 %v809_v1, %v808_v46 }
 0x23e   :  { %v801_v50 = vsel %vm87_vm0, %v773_v43, 0.0  ;;  %v879_v14 = vrot.slane %v878_v17, 4  ;;  %v856_v46 = vadd.f32 %v855_v16, %v854_v51 }
 0x23f   :  { %v744_v29 = vpop.permute.xlu1 %743  ;;  %v802_v30 = vrot.slane %v801_v50, 4  ;;  %v848_v35 = vrot.slane %v847_v52, 1  ;;  %v811_v37 = vrot.slane %v810_v55, 2 }
 0x240   :  { %v781_v58 = vmul.f32 %v744_v29, %v37_v42  ;;  %v880_v15 = vadd.f32 %v879_v14, %v878_v17  ;;  %v793_v29 = vadd.f32 %v792_v19, %v791_v8 }
 0x241   :  { %v803_v3 = vadd.f32 %v802_v30, %v801_v50  ;;  %v34_v50 = vld [vmem:[%s1791_s0 + $0x38] sm:$0xff]  ;;  %v849_v17 = vadd.f32 %v848_v35, %v847_v52 }
 0x242   :  { %v857_v63 = vsel %vm87_vm0, %v781_v58, 0.0  ;;  %v881_v38 = vrot.slane %v880_v15, 2 }
 0x243   :  { %v719_v0 = vpop.permute.xlu1 %718  ;;  %v858_v24 = vrot.slane %v857_v63, 4  ;;  %v804_v57 = vrot.slane %v803_v3, 2  ;;  %v929_v4 = vsel %vm915_vm4, %v856_v46, %v849_v17 }
 0x244   :  { %v776_v6 = vmul.f32 %v719_v0, %v32_v61  ;;  %v812_v61 = vadd.f32 %v811_v37, %v810_v55  ;;  %v33_v0 = vld [vmem:[%s1791_s0 + $0x30] sm:$0xff]  ;;  %v882_v40 = vadd.f32 %v881_v38, %v880_v15  ;;  %s1271_s0 = smov [#allocation2]  }
 0x245   :  { %v859_v21 = vadd.f32 %v858_v24, %v857_v63  ;;  %v805_v43 = vadd.f32 %v804_v57, %v803_v3  ;;  %s978_s25 = sshll.u32 %s1271_s0, 4  ;;  %s979_s25 = int_to_ptr.vmem [resolvable:$true] %s978_s25 }
 0x246   :  { %v822_v13 = vsel %vm87_vm0, %v776_v6, 0.0  ;;  %v883_v51 = vrot.slane %v882_v40, 1  ;;  %s1221_s26 = scalar_lea.vmem %s979_s25, 256  ;;  %p1226_p1 = scmp.lt.s32.totalorder %s979_s25, %s979_s25 }
 0x247   :  { %v764_v11 = vpop.permute.xlu0 %763  ;;  %v714_v34 = vpop.permute.xlu1 %713  ;;  %v860_v7 = vrot.slane %v859_v21, 2  ;;  %v823_v22 = vrot.slane %v822_v13, 4  ;;  %v806_v49 = vrot.slane %v805_v43, 1  ;;  %p1222_p0 = scmp.ne.s32.totalorder %s979_s25, %s1221_s26  ;;  %p1227_p2 = scmp.lt.s32.totalorder %s1221_s26, %s1221_s26 }
 0x248   :  { %v785_v10 = vmul.f32 %v764_v11, %v41_v2  ;;  %v775_v26 = vmul.f32 %v714_v34, %v31_v9  ;;  %v813_v34 = vrot.slane %v812_v61, 1 }
 0x249   :  { %v861_v32 = vadd.f32 %v860_v7, %v859_v21  ;;  %v824_v45 = vadd.f32 %v823_v22, %v822_v13  ;;  %v869_v13 = vrot.slane %v868_v20, 1  ;;  %p1228_p3 = por %p1227_p2, %p1226_p1 }
 0x24a   :  { %v885_v18 = vsel %vm87_vm0, %v785_v10, 0.0  ;;  %v815_v36 = vsel %vm87_vm0, %v775_v26, 0.0  ;;  %v814_v38 = vadd.f32 %v813_v34, %v812_v61 }
 0x24b   :  { %v886_v23 = vrot.slane %v885_v18, 4  ;;  %v769_v27 = vpop.permute.xlu0 %768  ;;  %v754_v33 = vpop.permute.xlu1 %753  ;;  %v816_v31 = vrot.slane %v815_v36, 4  ;;  %v862_v53 = vrot.slane %v861_v32, 1  ;;  %v825_v1 = vrot.slane %v824_v45, 2  ;;  %p1229_p4 = pnand %p1228_p3, %p1222_p0 }
 0x24c   :  { %v786_v48 = vmul.f32 %v769_v27, %v42_v12  ;;  %v783_v39 = vmul.f32 %v754_v33, %v39_v44  ;;  %v807_v12 = vadd.f32 %v806_v49, %v805_v43  ;;  %v870_v44 = vadd.f32 %v869_v13, %v868_v20 }
 0x24d   :  { %v887_v59 = vadd.f32 %v886_v23, %v885_v18  ;;  %v817_v47 = vadd.f32 %v816_v31, %v815_v36  ;;  %v863_v2 = vadd.f32 %v862_v53, %v861_v32  ;;  %v826_v15 = vadd.f32 %v825_v1, %v824_v45 }
 0x24e   :  { %v892_v41 = vsel %vm87_vm0, %v786_v48, 0.0  ;;  %v871_v54 = vsel %vm87_vm0, %v783_v39, 0.0  ;;  %v916_v32 = vsel %vm915_vm4, %v1733_v25, %v793_v29  ;;  %v884_v36 = vadd.f32 %v883_v51, %v882_v40 }
 0x24f   :  { %v893_v42 = vrot.slane %v892_v41, 4  ;;  %v729_v56 = vpop.permute.xlu1 %728  ;;  %v818_v58 = vrot.slane %v817_v47, 2  ;;  %v888_v60 = vrot.slane %v887_v59, 2  ;;  %v872_v30 = vrot.slane %v871_v54, 4 }
 0x250   :  { %v778_v63 = vmul.f32 %v729_v56, %v34_v50  ;;  %v930_v19 = vsel %vm917_vm5, %v863_v2, %v929_v4  ;;  %v918_v16 = vsel %vm917_vm5, %v807_v12, %v916_v32 }
 0x251   :  { %v894_v62 = vadd.f32 %v893_v42, %v892_v41  ;;  %v873_v24 = vadd.f32 %v872_v30, %v871_v54  ;;  %v819_v5 = vadd.f32 %v818_v58, %v817_v47  ;;  %v889_v3 = vadd.f32 %v888_v60, %v887_v59 }
 0x252   :  { %v836_v6 = vsel %vm87_vm0, %v778_v63, 0.0  ;;  %v931_v37 = vsel %vm919_vm6, %v870_v44, %v930_v19  ;;  %v827_v59 = vrot.slane %v826_v15, 1  ;;  %v920_v25 = vsel %vm919_vm6, %v814_v38, %v918_v16 }
 0x253   :  { %v895_v14 = vrot.slane %v894_v62, 2  ;;  %v724_v8 = vpop.permute.xlu1 %723  ;;  %v874_v21 = vrot.slane %v873_v24, 2  ;;  %v837_v9 = vrot.slane %v836_v6, 4  ;;  %v820_v26 = vrot.slane %v819_v5, 1 }
 0x254   :  { %v777_v11 = vmul.f32 %v724_v8, %v33_v0  ;;  %v890_v57 = vrot.slane %v889_v3, 1  ;;  %v828_v54 = vadd.f32 %v827_v59, %v826_v15 }
 0x255   :  { %v896_v10 = vadd.f32 %v895_v14, %v894_v62  ;;  %v875_v52 = vadd.f32 %v874_v21, %v873_v24  ;;  %v838_v55 = vadd.f32 %v837_v9, %v836_v6  ;;  %v821_v35 = vadd.f32 %v820_v26, %v819_v5 }
 0x256   :  { %v829_v7 = vsel %vm87_vm0, %v777_v11, 0.0  ;;  %v891_v39 = vadd.f32 %v890_v57, %v889_v3 }
 0x257   :  { %v830_v18 = vrot.slane %v829_v7, 4  ;;  %v876_v22 = vrot.slane %v875_v52, 1  ;;  %v839_v23 = vrot.slane %v838_v55, 2  ;;  %v897_v27 = vrot.slane %v896_v10, 1 }
 0x258   :  { %v922_v29 = vsel %vm921_vm7, %v821_v35, %v920_v25 }
 0x259   :  { %v831_v28 = vadd.f32 %v830_v18, %v829_v7  ;;  %v877_v33 = vadd.f32 %v876_v22, %v875_v52  ;;  %v840_v48 = vadd.f32 %v839_v23, %v838_v55  ;;  %v898_v43 = vadd.f32 %v897_v27, %v896_v10 }
 0x25a   :  { %v924_v58 = vsel %vm923_vm9, %v828_v54, %v922_v29 }
 0x25b   :  { %v832_v31 = vrot.slane %v831_v28, 2  ;;  %v932_v41 = vsel %vm921_vm7, %v877_v33, %v931_v37  ;;  %v841_v42 = vrot.slane %v840_v48, 1 }
 0x25c   :  { %v933_v47 = vsel %vm923_vm9, %v884_v36, %v932_v41 }
 0x25d   :  { %v833_v45 = vadd.f32 %v832_v31, %v831_v28  ;;  %v934_v50 = vsel %vm925_vm8, %v891_v39, %v933_v47  ;;  %v842_v46 = vadd.f32 %v841_v42, %v840_v48 }
 0x25e   :  { %v935_v53 = vsel %vm927_vm10, %v898_v43, %v934_v50 }
 0x25f   :  { %v834_v20 = vrot.slane %v833_v45, 1  ;;  %939 = vst.msk [vmem:[#allocation2 + $0x8] sm:$0xff] %vm87_vm0, %v935_v53 }
 0x261   :  { %v835_v56 = vadd.f32 %v834_v20, %v833_v45 }
 0x263   :  { %v926_v60 = vsel %vm925_vm8, %v835_v56, %v924_v58 }
 0x264   :  { %v928_v30 = vsel %vm927_vm10, %v842_v46, %v926_v60 }
 0x265   :  { %938 = vst.msk [vmem:[#allocation2] sm:$0xff] %vm87_vm0, %v928_v30 }
 0x266   :  { %1232 = shalt.err (!%p1229_p4)
}
 0x267   :  { %s1233_s29 = scalar_lea.hbm %s1797_s6, 256 }
 0x268   :  { %p1234_p5 = scmp.ne.s32.totalorder %s1797_s6, %s1233_s29  ;;  %p1237_p6 = scmp.lt.u32.totalorder %s1233_s29, %s1797_s6 }
 0x26a   :  { %p1239_p7 = pnand %p1237_p6, %p1234_p5 }
 0x26c   :  { %1242 = shalt.err (!%p1239_p7)
}
 0x26d   :  { %s1272_s11 = smov 128   ;;  %s1273_s12 = smov 8  }
 0x26e   :  { %984 = dma.vmem_to_hbm [thread:$0]  %s979_s25, 256, %s1797_s6, [#allocation3], %s1272_s11, %s1272_s11, %s1273_s12  }
 0x26f   :  { %s1274_s14 = smov [#allocation4]  }
 0x270   :  { %s991_s15 = sshll.u32 %s1274_s14, 4  ;;  %s992_s15 = int_to_ptr.vmem [resolvable:$true] %s991_s15 }
 0x271   :  { %s1243_s16 = scalar_lea.vmem %s992_s15, 16  ;;  %s1247_s17 = scalar_lea.vmem %s992_s15, 32 }
 0x272   :  { %p1244_p8 = scmp.ne.s32.totalorder %s992_s15, %s1243_s16  ;;  %p1248_p9 = scmp.lt.s32.totalorder %s992_s15, %s992_s15 }
 0x273   :  { %p1249_p10 = scmp.lt.s32.totalorder %s1247_s17, %s1243_s16 }
 0x275   :  { %p1250_p11 = por %p1249_p10, %p1248_p9 }
 0x277   :  { %p1251_p12 = pnand %p1250_p11, %p1244_p8 }
 0x27d   :  { %v956_v17 = vpop.trf.xlu1 }
 0x27e   :  { %972 = vst [vmem:[#allocation4] sm:$0x1] %v956_v17 }
 0x27f   :  { %1254 = shalt.err (!%p1251_p12)
}
 0x280   :  { %s1255_s5 = scalar_lea.hbm %s1798_s7, 16 }
 0x281   :  { %p1256_p13 = scmp.ne.s32.totalorder %s1798_s7, %s1255_s5  ;;  %p1259_p0 = scmp.lt.u32.totalorder %s1255_s5, %s1798_s7 }
 0x283   :  { %p1261_p1 = pnand %p1259_p0, %p1256_p13 }
 0x285   :  { %1264 = shalt.err (!%p1261_p1)
}
 0x286   :  { %994 = dma.vmem_to_hbm [thread:$0]  %s992_s15, 16, %s1798_s7, [#allocation5]  }
 0x287   :  { %1265 = dma.done.wait [#allocation3], 256  }
 0x288   :  { %1266 = vsyncadd [#allocation3], 4294967040 }
 0x289   :  { %1267 = dma.done.wait [#allocation5], 16  }
 0x28a   :  { %1268 = vsyncadd [#allocation5], 4294967280 }
 0x28b   :  { %1001 = vsyncpa [#allocation3], 1 }
 0x28c   :  { %1002 = vsyncpa [#allocation5], 1 }

</bundles_post_ra>
